<compile_context>
chip_gen: v7x
topology: tpu7x:2x2x1
jax: 0.10.0
libtpu: 0.0.40
codegen_flags: <defaults>
</compile_context>

<pallas_src>
import functools

import jax
import jax.numpy as jnp
from jax.experimental import pallas as pl
from jax.experimental.pallas import tpu as pltpu


# ----------------------------------------------------------------------------
# Pallas kernel
# ----------------------------------------------------------------------------
def _dilated_conv_from_buf(buf_ref, w_ref, *, k, d, tl, c, fuse):
    """Causal dilated conv from a staged buffer.

    buf_ref holds [p rows of left context ; tl rows of current tile], dtype =
    MXU compute dtype.  w_ref is the flattened weight (k*c, C_out).  Returns an
    f32 (tl, C_out) accumulator.
    """
    if fuse and k > 1:
        # im2col along lanes: one matmul with contraction dim k*c.
        lhs = jnp.concatenate(
            [buf_ref[j * d:j * d + tl, :] for j in range(k)], axis=-1)
        return jnp.dot(lhs, w_ref[...], preferred_element_type=jnp.float32)
    acc = jnp.dot(buf_ref[0:tl, :], w_ref[0:c, :],
                  preferred_element_type=jnp.float32)
    for j in range(1, k):
        acc = acc + jnp.dot(buf_ref[j * d:j * d + tl, :],
                            w_ref[j * c:(j + 1) * c, :],
                            preferred_element_type=jnp.float32)
    return acc


def _temporal_block_kernel(*refs, k, d, p, tl, c_in, c_out,
                           has_downsample, fuse1, fuse2):
    if has_downsample:
        (x_ref, w1_ref, b1_ref, w2_ref, b2_ref, wd_ref, bd_ref,
         o_ref, xbuf, h1buf) = refs
    else:
        (x_ref, w1_ref, b1_ref, w2_ref, b2_ref,
         o_ref, xbuf, h1buf) = refs

    t = pl.program_id(1)
    x = x_ref[0]                                   # (tl, C_in), f32

    # ---- causal left context: zeros at the start of each sequence, otherwise
    #      carry the last p rows of the previous time tile (for x and h1).
    if p > 0:
        @pl.when(t == 0)
        def _init_halo():
            xbuf[0:p, :] = jnp.zeros((p, c_in), xbuf.dtype)
            h1buf[0:p, :] = jnp.zeros((p, c_out), h1buf.dtype)

        @pl.when(t > 0)
        def _carry_halo():
            xbuf[0:p, :] = xbuf[tl:tl + p, :]
            h1buf[0:p, :] = h1buf[tl:tl + p, :]

    # stage current x tile in the MXU compute dtype
    xbuf[p:p + tl, :] = x.astype(xbuf.dtype)

    # ---- conv1 (causal dilated) + bias + ReLU; dropout == identity in eval ----
    acc1 = _dilated_conv_from_buf(xbuf, w1_ref, k=k, d=d, tl=tl, c=c_in, fuse=fuse1)
    h1 = jnp.maximum(acc1 + b1_ref[...], 0.0)      # f32 elementwise

    h1buf[p:p + tl, :] = h1.astype(h1buf.dtype)

    # ---- conv2 (causal dilated) + bias + ReLU ----
    acc2 = _dilated_conv_from_buf(h1buf, w2_ref, k=k, d=d, tl=tl, c=c_out, fuse=fuse2)
    h2 = jnp.maximum(acc2 + b2_ref[...], 0.0)

    # ---- residual (1x1 conv iff C_in != C_out, else identity in f32) + ReLU ----
    if has_downsample:
        res = jnp.dot(x.astype(wd_ref.dtype), wd_ref[...],
                      preferred_element_type=jnp.float32) + bd_ref[...]
    else:
        res = x
    o_ref[0] = jnp.maximum(h2 + res, 0.0).astype(o_ref.dtype)


# ----------------------------------------------------------------------------
# Wrappers (layout glue, weight-norm folding, pallas_call plumbing)
# ----------------------------------------------------------------------------
def _weight_norm_effective(v, g):
    # PyTorch weight_norm default dim=0: per-output-channel norm over (in, k)
    norm = jnp.sqrt(jnp.sum(v * v, axis=(1, 2), keepdims=True))
    return v * (g[:, None, None] / norm)


def temporal_block_forward_nlc(x_nlc, params, *, kernel_size, dilation, padding,
                               time_tile=512, compute_dtype=jnp.bfloat16):
    """Channels-last entry point: x_nlc is (B, L, C_in); returns (B, L, C_out)."""
    B, L, C_in = x_nlc.shape
    k, d, p = kernel_size, dilation, padding
    assert p == (k - 1) * d, "kernel implements the standard causal-TCN config"

    w1 = _weight_norm_effective(params["conv1_v"], params["conv1_g"])  # (C_out, C_in, k)
    w2 = _weight_norm_effective(params["conv2_v"], params["conv2_g"])  # (C_out, C_out, k)
    C_out = w1.shape[0]
    has_downsample = C_in != C_out

    # flatten weights as (k*C, C_out): row index = tap*C + channel
    w1_flat = jnp.transpose(w1, (2, 1, 0)).reshape(k * C_in, C_out).astype(compute_dtype)
    w2_flat = jnp.transpose(w2, (2, 1, 0)).reshape(k * C_out, C_out).astype(compute_dtype)
    b1 = params["conv1_b"].reshape(1, C_out).astype(jnp.float32)
    b2 = params["conv2_b"].reshape(1, C_out).astype(jnp.float32)

    # ---- time tiling: TL multiple of 8, >= p, <= time_tile ----
    TL = min(L, time_tile)
    TL = max(TL, max(p, 1))
    TL = ((TL + 7) // 8) * 8
    num_t = -(-L // TL)
    L_pad = num_t * TL

    x_in = x_nlc.astype(jnp.float32)
    if L_pad != L:
        # zero tail padding; causal conv => padded rows never affect real rows
        x_in = jnp.pad(x_in, ((0, 0), (0, L_pad - L), (0, 0)))

    args = [x_in, w1_flat, b1, w2_flat, b2]
    in_specs = [
        pl.BlockSpec((1, TL, C_in), lambda b, t: (b, t, 0)),
        pl.BlockSpec((k * C_in, C_out), lambda b, t: (0, 0)),
        pl.BlockSpec((1, C_out), lambda b, t: (0, 0)),
        pl.BlockSpec((k * C_out, C_out), lambda b, t: (0, 0)),
        pl.BlockSpec((1, C_out), lambda b, t: (0, 0)),
    ]
    if has_downsample:
        wd = jnp.transpose(params["down_w"][:, :, 0], (1, 0)).astype(compute_dtype)  # (C_in, C_out)
        bd = params["down_b"].reshape(1, C_out).astype(jnp.float32)
        args += [wd, bd]
        in_specs += [
            pl.BlockSpec((C_in, C_out), lambda b, t: (0, 0)),
            pl.BlockSpec((1, C_out), lambda b, t: (0, 0)),
        ]

    fuse1 = C_in < 128     # fill MXU contraction dim when channels are narrow
    fuse2 = C_out < 128

    kernel = functools.partial(
        _temporal_block_kernel, k=k, d=d, p=p, tl=TL, c_in=C_in, c_out=C_out,
        has_downsample=has_downsample, fuse1=fuse1, fuse2=fuse2)

    # ---- VMEM budget (double-buffered blocks + scratch) + headroom ----
    elt = jnp.dtype(compute_dtype).itemsize
    vmem_bytes = (
        2 * TL * C_in * 4 + 2 * TL * C_out * 4                                  # x / out blocks (f32)
        + 2 * (k * C_in * C_out + k * C_out * C_out + C_in * C_out + 2 * C_out) * elt  # weights/bias
        + (p + TL) * (C_in + C_out) * elt                                       # staging scratch
    )
    vmem_limit = int(min(128 * 1024 * 1024,
                         max(vmem_bytes + (8 << 20), 32 * 1024 * 1024)))

    y = pl.pallas_call(
        kernel,
        out_shape=jax.ShapeDtypeStruct((B, L_pad, C_out), x_nlc.dtype),
        grid_spec=pltpu.PrefetchScalarGridSpec(
            num_scalar_prefetch=0,
            grid=(B, num_t),
            in_specs=in_specs,
            out_specs=pl.BlockSpec((1, TL, C_out), lambda b, t: (b, t, 0)),
            scratch_shapes=[
                pltpu.VMEM((p + TL, C_in), compute_dtype),   # x staging + causal carry
                pltpu.VMEM((p + TL, C_out), compute_dtype),  # h1 staging + causal carry
            ],
        ),
        compiler_params=pltpu.CompilerParams(
            dimension_semantics=("parallel", "arbitrary"),
            vmem_limit_bytes=vmem_limit,
        ),
    )(*args)

    return y[:, :L, :] if L_pad != L else y


def temporal_block_forward(x_ncl, params, *, kernel_size, dilation, padding,
                           time_tile=512, compute_dtype=jnp.bfloat16):
    """PyTorch-convention entry point: x_ncl is (B, C_in, L); returns (B, C_out, L)."""
    # TODO(synk): keep the surrounding model channels-last (B, L, C) and call
    # temporal_block_forward_nlc directly to avoid these HBM transposes.
    x_nlc = jnp.transpose(x_ncl, (0, 2, 1))
    y_nlc = temporal_block_forward_nlc(
        x_nlc, params, kernel_size=kernel_size, dilation=dilation,
        padding=padding, time_tile=time_tile, compute_dtype=compute_dtype)
    return jnp.transpose(y_nlc, (0, 2, 1))


# ----------------------------------------------------------------------------
# Pure-JAX reference (mirrors the PyTorch module op-for-op) for validation.
# ----------------------------------------------------------------------------
def _ref_conv1d(x, w, b, padding, dilation):
    out = jax.lax.conv_general_dilated(
        x, w, window_strides=(1,), padding=[(padding, padding)],
        rhs_dilation=(dilation,), dimension_numbers=("NCH", "OIH", "NCH"))
    return out + b[None, :, None]


def temporal_block_reference(x, params, *, kernel_size, dilation, padding):
    w1 = _weight_norm_effective(params["conv1_v"], params["conv1_g"])
    w2 = _weight_norm_effective(params["conv2_v"], params["conv2_g"])
    p = padding
    h = _ref_conv1d(x, w1, params["conv1_b"], p, dilation)[:, :, :-p]   # Chomp1d
    h = jax.nn.relu(h)                                                  # dropout: identity (eval)
    h = _ref_conv1d(h, w2, params["conv2_b"], p, dilation)[:, :, :-p]
    h = jax.nn.relu(h)
    if x.shape[1] != w1.shape[0]:
        res = _ref_conv1d(x, params["down_w"], params["down_b"], 0, 1)
    else:
        res = x
    return jax.nn.relu(h + res)


# ----------------------------------------------------------------------------
def _init_params(key, C_in, C_out, k):
    ks = jax.random.split(key, 6)
    # init_weights(): conv weights ~ N(0, 0.01); weight_norm init: g = ||v||
    conv1_v = 0.01 * jax.random.normal(ks[0], (C_out, C_in, k), jnp.float32)
    conv2_v = 0.01 * jax.random.normal(ks[1], (C_out, C_out, k), jnp.float32)
    down_w = 0.01 * jax.random.normal(ks[2], (C_out, C_in, 1), jnp.float32)
    conv1_g = jnp.sqrt(jnp.sum(conv1_v ** 2, axis=(1, 2)))
    conv2_g = jnp.sqrt(jnp.sum(conv2_v ** 2, axis=(1, 2)))
    # biases: PyTorch Conv1d default U(-1/sqrt(fan_in), 1/sqrt(fan_in))
    conv1_b = jax.random.uniform(ks[3], (C_out,), jnp.float32,
                                 -1.0 / (C_in * k) ** 0.5, 1.0 / (C_in * k) ** 0.5)
    conv2_b = jax.random.uniform(ks[4], (C_out,), jnp.float32,
                                 -1.0 / (C_out * k) ** 0.5, 1.0 / (C_out * k) ** 0.5)
    down_b = jax.random.uniform(ks[5], (C_out,), jnp.float32,
                                -1.0 / C_in ** 0.5, 1.0 / C_in ** 0.5)
    return dict(conv1_v=conv1_v, conv1_g=conv1_g, conv1_b=conv1_b,
                conv2_v=conv2_v, conv2_g=conv2_g, conv2_b=conv2_b,
                down_w=down_w, down_b=down_b)


if __name__ == "__main__":
    key = jax.random.PRNGKey(0)

    # (B, C_in, C_out, L, k, d, time_tile)
    cases = [
        (2, 4, 8, 16, 3, 2, 512),  # downsample residual, single time tile
        (2, 4, 8, 16, 3, 2, 8),    # multi time-tile: exercises the causal halo carry
        (2, 8, 8, 20, 3, 1, 8),    # identity residual + L padded up to a tile multiple
    ]

    for idx, (B, C_in, C_out, L, k, d, tl) in enumerate(cases):
        p = (k - 1) * d
        kp, kx, key = jax.random.split(key, 3)
        params = _init_params(kp, C_in, C_out, k)
        x = jax.random.normal(kx, (B, C_in, L), jnp.float32)   # PyTorch NCL input

        y_ref = temporal_block_reference(x, params, kernel_size=k, dilation=d, padding=p)

        # exact path: f32 MXU operands
        y32 = temporal_block_forward(x, params, kernel_size=k, dilation=d, padding=p,
                                     time_tile=tl, compute_dtype=jnp.float32)
        y32 = jax.block_until_ready(y32)
        assert y32.shape == (B, C_out, L)
        assert jnp.allclose(y32, y_ref, atol=5e-5, rtol=5e-5), f"case {idx}: f32 mismatch"

        # fast path: bf16 MXU operands, f32 accumulation / elementwise
        ybf = temporal_block_forward(x, params, kernel_size=k, dilation=d, padding=p,
                                     time_tile=tl, compute_dtype=jnp.bfloat16)
        ybf = jax.block_until_ready(ybf)
        assert ybf.shape == (B, C_out, L)
        assert jnp.allclose(ybf, y_ref, atol=2e-2, rtol=2e-2), f"case {idx}: bf16 mismatch"

    print("KERNEL_OK")
</pallas_src>

<mosaic_0001>
module attributes {stable_mosaic.version = 11 : i64} {
  func.func @_temporal_block_kernel(%arg0: i32, %arg1: i32, %arg2: memref<1x16x4xf32, #tpu.memory_space<vmem>>, %arg3: memref<12x8xf32, #tpu.memory_space<vmem>>, %arg4: memref<1x8xf32, #tpu.memory_space<vmem>>, %arg5: memref<24x8xf32, #tpu.memory_space<vmem>>, %arg6: memref<1x8xf32, #tpu.memory_space<vmem>>, %arg7: memref<4x8xf32, #tpu.memory_space<vmem>>, %arg8: memref<1x8xf32, #tpu.memory_space<vmem>>, %arg9: memref<1x16x8xf32, #tpu.memory_space<vmem>>, %arg10: memref<20x4xf32, #tpu.memory_space<vmem>>, %arg11: memref<20x8xf32, #tpu.memory_space<vmem>>) attributes {dimension_semantics = [#tpu.dimension_semantics<parallel>, #tpu.dimension_semantics<arbitrary>], iteration_bounds = array<i64: 2, 1>, scalar_prefetch = 0 : i64, scratch_operands = 2 : i64, tpu.core_type = #tpu.core_type<tc>, window_params = [{transform_indices = @transform_0, window_bounds = array<i64: 1, 16, 4>}, {pipeline_mode = #tpu.pipeline_mode<synchronous>, transform_indices = @transform_1, window_bounds = array<i64: 12, 8>}, {pipeline_mode = #tpu.pipeline_mode<synchronous>, transform_indices = @transform_2, window_bounds = array<i64: 1, 8>}, {pipeline_mode = #tpu.pipeline_mode<synchronous>, transform_indices = @transform_3, window_bounds = array<i64: 24, 8>}, {pipeline_mode = #tpu.pipeline_mode<synchronous>, transform_indices = @transform_4, window_bounds = array<i64: 1, 8>}, {pipeline_mode = #tpu.pipeline_mode<synchronous>, transform_indices = @transform_5, window_bounds = array<i64: 4, 8>}, {pipeline_mode = #tpu.pipeline_mode<synchronous>, transform_indices = @transform_6, window_bounds = array<i64: 1, 8>}, {transform_indices = @transform_7, window_bounds = array<i64: 1, 16, 8>}]} {
    %c0 = arith.constant 0 : index
    %c0_0 = arith.constant 0 : index
    %c0_1 = arith.constant 0 : index
    %0 = vector.load %arg2[%c0, %c0_0, %c0_1] : memref<1x16x4xf32, #tpu.memory_space<vmem>>, vector<1x16x4xf32>
    %1 = vector.shape_cast %0 : vector<1x16x4xf32> to vector<16x4xf32>
    %c0_i32 = arith.constant 0 : i32
    %2 = arith.cmpi eq, %arg1, %c0_i32 : i32
    %3 = arith.extui %2 : i1 to i32
    %c0_i32_2 = arith.constant 0 : i32
    %4 = arith.cmpi ne, %3, %c0_i32_2 : i32
    scf.if %4 {
      %cst_39 = arith.constant 0.000000e+00 : f32
      %43 = vector.broadcast %cst_39 : f32 to vector<4x4xf32>
      %c0_40 = arith.constant 0 : index
      %c0_41 = arith.constant 0 : index
      %44 = vector.load %arg10[%c0_40, %c0_41] : memref<20x4xf32, #tpu.memory_space<vmem>>, vector<4x4xf32>
      tpu.vector_store %arg10[%c0_40, %c0_41], %43 {strides = array<i32>} : memref<20x4xf32, #tpu.memory_space<vmem>>, vector<4x4xf32>,
      %cst_42 = arith.constant 0.000000e+00 : f32
      %45 = vector.broadcast %cst_42 : f32 to vector<4x8xf32>
      %c0_43 = arith.constant 0 : index
      %c0_44 = arith.constant 0 : index
      %46 = vector.load %arg11[%c0_43, %c0_44] : memref<20x8xf32, #tpu.memory_space<vmem>>, vector<4x8xf32>
      tpu.vector_store %arg11[%c0_43, %c0_44], %45 {strides = array<i32>} : memref<20x8xf32, #tpu.memory_space<vmem>>, vector<4x8xf32>,
    } else {
    }
    %c0_i32_3 = arith.constant 0 : i32
    %5 = arith.cmpi sgt, %arg1, %c0_i32_3 : i32
    %6 = arith.extui %5 : i1 to i32
    %c0_i32_4 = arith.constant 0 : i32
    %7 = arith.cmpi ne, %6, %c0_i32_4 : i32
    scf.if %7 {
      %c16 = arith.constant 16 : index
      %c0_39 = arith.constant 0 : index
      %43 = vector.load %arg10[%c16, %c0_39] : memref<20x4xf32, #tpu.memory_space<vmem>>, vector<4x4xf32>
      %c0_40 = arith.constant 0 : index
      %c0_41 = arith.constant 0 : index
      %44 = vector.load %arg10[%c0_40, %c0_41] : memref<20x4xf32, #tpu.memory_space<vmem>>, vector<4x4xf32>
      tpu.vector_store %arg10[%c0_40, %c0_41], %43 {strides = array<i32>} : memref<20x4xf32, #tpu.memory_space<vmem>>, vector<4x4xf32>,
      %c16_42 = arith.constant 16 : index
      %c0_43 = arith.constant 0 : index
      %45 = vector.load %arg11[%c16_42, %c0_43] : memref<20x8xf32, #tpu.memory_space<vmem>>, vector<4x8xf32>
      %c0_44 = arith.constant 0 : index
      %c0_45 = arith.constant 0 : index
      %46 = vector.load %arg11[%c0_44, %c0_45] : memref<20x8xf32, #tpu.memory_space<vmem>>, vector<4x8xf32>
      tpu.vector_store %arg11[%c0_44, %c0_45], %45 {strides = array<i32>} : memref<20x8xf32, #tpu.memory_space<vmem>>, vector<4x8xf32>,
    } else {
    }
    %c4 = arith.constant 4 : index
    %c0_5 = arith.constant 0 : index
    %8 = vector.load %arg10[%c4, %c0_5] : memref<20x4xf32, #tpu.memory_space<vmem>>, vector<16x4xf32>
    tpu.vector_store %arg10[%c4, %c0_5], %1 {strides = array<i32>} : memref<20x4xf32, #tpu.memory_space<vmem>>, vector<16x4xf32>,
    %c0_6 = arith.constant 0 : index
    %c0_7 = arith.constant 0 : index
    %9 = vector.load %arg10[%c0_6, %c0_7] : memref<20x4xf32, #tpu.memory_space<vmem>>, vector<16x4xf32>
    %c2 = arith.constant 2 : index
    %c0_8 = arith.constant 0 : index
    %10 = vector.load %arg10[%c2, %c0_8] : memref<20x4xf32, #tpu.memory_space<vmem>>, vector<16x4xf32>
    %c4_9 = arith.constant 4 : index
    %c0_10 = arith.constant 0 : index
    %11 = vector.load %arg10[%c4_9, %c0_10] : memref<20x4xf32, #tpu.memory_space<vmem>>, vector<16x4xf32>
    %12 = tpu.concatenate %9, %10, %11 in 1 : vector<16x4xf32>, vector<16x4xf32>, vector<16x4xf32> -> vector<16x12xf32>
    %c0_11 = arith.constant 0 : index
    %c0_12 = arith.constant 0 : index
    %13 = vector.load %arg3[%c0_11, %c0_12] : memref<12x8xf32, #tpu.memory_space<vmem>>, vector<12x8xf32>
    %cst = arith.constant dense<0.000000e+00> : vector<16x8xf32>
    %14 = tpu.matmul %12, %13, %cst {dimension_numbers = #tpu.dot_dimension_numbers<[1], [0], [0], [1], [0, 0, 1, 1], [], []>} : vector<16x12xf32>, vector<12x8xf32>, vector<16x8xf32> -> vector<16x8xf32>
    %c0_13 = arith.constant 0 : index
    %c0_14 = arith.constant 0 : index
    %15 = vector.load %arg4[%c0_13, %c0_14] : memref<1x8xf32, #tpu.memory_space<vmem>>, vector<1x8xf32>
    %16 = vector.broadcast %15 : vector<1x8xf32> to vector<16x8xf32>
    %17 = arith.addf %14, %16 : vector<16x8xf32>
    %cst_15 = arith.constant 0.000000e+00 : f32
    %18 = vector.broadcast %cst_15 : f32 to vector<16x8xf32>
    %19 = arith.maximumf %17, %18 : vector<16x8xf32>
    %c4_16 = arith.constant 4 : index
    %c0_17 = arith.constant 0 : index
    %20 = vector.load %arg11[%c4_16, %c0_17] : memref<20x8xf32, #tpu.memory_space<vmem>>, vector<16x8xf32>
    tpu.vector_store %arg11[%c4_16, %c0_17], %19 {strides = array<i32>} : memref<20x8xf32, #tpu.memory_space<vmem>>, vector<16x8xf32>,
    %c0_18 = arith.constant 0 : index
    %c0_19 = arith.constant 0 : index
    %21 = vector.load %arg11[%c0_18, %c0_19] : memref<20x8xf32, #tpu.memory_space<vmem>>, vector<16x8xf32>
    %c2_20 = arith.constant 2 : index
    %c0_21 = arith.constant 0 : index
    %22 = vector.load %arg11[%c2_20, %c0_21] : memref<20x8xf32, #tpu.memory_space<vmem>>, vector<16x8xf32>
    %c4_22 = arith.constant 4 : index
    %c0_23 = arith.constant 0 : index
    %23 = vector.load %arg11[%c4_22, %c0_23] : memref<20x8xf32, #tpu.memory_space<vmem>>, vector<16x8xf32>
    %24 = tpu.concatenate %21, %22, %23 in 1 : vector<16x8xf32>, vector<16x8xf32>, vector<16x8xf32> -> vector<16x24xf32>
    %c0_24 = arith.constant 0 : index
    %c0_25 = arith.constant 0 : index
    %25 = vector.load %arg5[%c0_24, %c0_25] : memref<24x8xf32, #tpu.memory_space<vmem>>, vector<24x8xf32>
    %cst_26 = arith.constant dense<0.000000e+00> : vector<16x8xf32>
    %26 = tpu.matmul %24, %25, %cst_26 {dimension_numbers = #tpu.dot_dimension_numbers<[1], [0], [0], [1], [0, 0, 1, 1], [], []>} : vector<16x24xf32>, vector<24x8xf32>, vector<16x8xf32> -> vector<16x8xf32>
    %c0_27 = arith.constant 0 : index
    %c0_28 = arith.constant 0 : index
    %27 = vector.load %arg6[%c0_27, %c0_28] : memref<1x8xf32, #tpu.memory_space<vmem>>, vector<1x8xf32>
    %28 = vector.broadcast %27 : vector<1x8xf32> to vector<16x8xf32>
    %29 = arith.addf %26, %28 : vector<16x8xf32>
    %cst_29 = arith.constant 0.000000e+00 : f32
    %30 = vector.broadcast %cst_29 : f32 to vector<16x8xf32>
    %31 = arith.maximumf %29, %30 : vector<16x8xf32>
    %c0_30 = arith.constant 0 : index
    %c0_31 = arith.constant 0 : index
    %32 = vector.load %arg7[%c0_30, %c0_31] : memref<4x8xf32, #tpu.memory_space<vmem>>, vector<4x8xf32>
    %cst_32 = arith.constant dense<0.000000e+00> : vector<16x8xf32>
    %33 = tpu.matmul %1, %32, %cst_32 {dimension_numbers = #tpu.dot_dimension_numbers<[1], [0], [0], [1], [0, 0, 1, 1], [], []>} : vector<16x4xf32>, vector<4x8xf32>, vector<16x8xf32> -> vector<16x8xf32>
    %c0_33 = arith.constant 0 : index
    %c0_34 = arith.constant 0 : index
    %34 = vector.load %arg8[%c0_33, %c0_34] : memref<1x8xf32, #tpu.memory_space<vmem>>, vector<1x8xf32>
    %35 = vector.broadcast %34 : vector<1x8xf32> to vector<16x8xf32>
    %36 = arith.addf %33, %35 : vector<16x8xf32>
    %37 = arith.addf %31, %36 : vector<16x8xf32>
    %cst_35 = arith.constant 0.000000e+00 : f32
    %38 = vector.broadcast %cst_35 : f32 to vector<16x8xf32>
    %39 = arith.maximumf %37, %38 : vector<16x8xf32>
    %c0_36 = arith.constant 0 : index
    %c0_37 = arith.constant 0 : index
    %c0_38 = arith.constant 0 : index
    %40 = vector.load %arg9[%c0_36, %c0_37, %c0_38] : memref<1x16x8xf32, #tpu.memory_space<vmem>>, vector<1x16x8xf32>
    %41 = vector.shape_cast %40 : vector<1x16x8xf32> to vector<16x8xf32>
    %42 = vector.shape_cast %39 : vector<16x8xf32> to vector<1x16x8xf32>
    tpu.vector_store %arg9[%c0_36, %c0_37, %c0_38], %42 {strides = array<i32>} : memref<1x16x8xf32, #tpu.memory_space<vmem>>, vector<1x16x8xf32>,
    return
  }
  func.func @transform_0(%arg0: i32, %arg1: i32) -> (i32, i32, i32) {
    %c0_i32 = arith.constant 0 : i32
    %c0_i32_0 = arith.constant 0 : i32
    return %arg0, %arg1, %c0_i32 : i32, i32, i32
  }
  func.func @transform_1(%arg0: i32, %arg1: i32) -> (i32, i32) {
    %c0_i32 = arith.constant 0 : i32
    %c0_i32_0 = arith.constant 0 : i32
    %c0_i32_1 = arith.constant 0 : i32
    return %c0_i32, %c0_i32_0 : i32, i32
  }
  func.func @transform_2(%arg0: i32, %arg1: i32) -> (i32, i32) {
    %c0_i32 = arith.constant 0 : i32
    %c0_i32_0 = arith.constant 0 : i32
    %c0_i32_1 = arith.constant 0 : i32
    return %c0_i32, %c0_i32_0 : i32, i32
  }
  func.func @transform_3(%arg0: i32, %arg1: i32) -> (i32, i32) {
    %c0_i32 = arith.constant 0 : i32
    %c0_i32_0 = arith.constant 0 : i32
    %c0_i32_1 = arith.constant 0 : i32
    return %c0_i32, %c0_i32_0 : i32, i32
  }
  func.func @transform_4(%arg0: i32, %arg1: i32) -> (i32, i32) {
    %c0_i32 = arith.constant 0 : i32
    %c0_i32_0 = arith.constant 0 : i32
    %c0_i32_1 = arith.constant 0 : i32
    return %c0_i32, %c0_i32_0 : i32, i32
  }
  func.func @transform_5(%arg0: i32, %arg1: i32) -> (i32, i32) {
    %c0_i32 = arith.constant 0 : i32
    %c0_i32_0 = arith.constant 0 : i32
    %c0_i32_1 = arith.constant 0 : i32
    return %c0_i32, %c0_i32_0 : i32, i32
  }
  func.func @transform_6(%arg0: i32, %arg1: i32) -> (i32, i32) {
    %c0_i32 = arith.constant 0 : i32
    %c0_i32_0 = arith.constant 0 : i32
    %c0_i32_1 = arith.constant 0 : i32
    return %c0_i32, %c0_i32_0 : i32, i32
  }
  func.func @transform_7(%arg0: i32, %arg1: i32) -> (i32, i32, i32) {
    %c0_i32 = arith.constant 0 : i32
    %c0_i32_0 = arith.constant 0 : i32
    return %arg0, %arg1, %c0_i32 : i32, i32, i32
  }
}

</mosaic_0001>

<bundles_post_ra>
// kernel: tpu_custom_call.1
= control target key start
LH: loop header
LB: loop body
LE: loop exit
PB: predicated region body
PF: predicated region fallthrough
CT: control target
= control target key end

     0   :  { %s938_s24 = smov 0   ;;  %s940_s25 = smov 0   ;;  %s1026_s0 = inlined_call_operand.vmem [shape: f32[2,16,4], index: 0, kind: input, shape index: {}]   ;;  %s1027_s1 = inlined_call_operand.vmem [shape: f32[12,8], index: 1, kind: input, shape index: {}]   ;;  %s1028_s2 = inlined_call_operand.vmem [shape: f32[1,8], index: 2, kind: input, shape index: {}]   ;;  %s1029_s3 = inlined_call_operand.vmem [shape: f32[24,8], index: 3, kind: input, shape index: {}]   ;;  %s1030_s4 = inlined_call_operand.vmem [shape: f32[1,8], index: 4, kind: input, shape index: {}]   ;;  %s1031_s5 = inlined_call_operand.vmem [shape: f32[4,8], index: 5, kind: input, shape index: {}]   ;;  %s1032_s6 = inlined_call_operand.vmem [shape: f32[1,8], index: 6, kind: input, shape index: {}]   ;;  %s1033_s7 = inlined_call_operand.vmem [shape: f32[2,16,8], index: 7, kind: output, shape index: {}]  }
   0x1   :  { %s942_s26 = smov 0  }
   0x2 LB: > { %s29_s27 = sadd.s32 1, %s887_s25  ;;  %p777_p0 = scmp.ge.s32.totalorder %s891_s26, 1  ;;  %s891_s26 = sphi %s942_s26, %s17_s26   ;;  %s887_s25 = sphi %s940_s25, %s1035_s25   ;;  %s883_s24 = sphi %s938_s24, %s1034_s24  }
   0x3   : > { %p31_p1 = scmp.ge.s32.totalorder %s29_s27, 2  ;;  %p258_p2 = scmp.lt.s32.totalorder %s891_s26, 3 }
   0x5   : > { %s1037_s27 = smov (%p31_p1, %s29_s27), 0  ;;  %p259_p3 = pnand %p777_p0, %p258_p2 }
   0x6   : > { %p299_p4 = scmp.lt.s32.totalorder (!%p259_p3), %s883_s24, 1  ;;  %vm324_vm0 = vcmask (!%p259_p3), 27648   ;;  %v893_v0 = vmov (!%p259_p3), 0.0   ;;  %v368_v1 = vld [vmem:[%s1027_s1] sm:$0xff] (!%p259_p3)  ;;  %v369_v2 = vld [vmem:[%s1027_s1 + $0x8] sm:$0xf] (!%p259_p3) }
   0x7   : > { %262 = sbr.rel (%p259_p3) target bundleno = 715 (0x2cb), region = 48  ;;  %325 = vst.msk [vmem:[#allocation2] sm:$0xf] (!%p259_p3), %vm324_vm0, %v893_v0  ;;  %vm384_vm1 = vcmask (!%p259_p3), 1043456   ;;  %v830_v3 = vpack.c.bf16 (!%p259_p3), %v369_v2, %v368_v1  ;;  %vm894_vm2 = vmmov (!%p259_p3), 1   ;;  %vm338_vm4 = vcmask (!%p259_p3), 31744  }
   0x8   : > { %vm831_vm3 = vmpackc.low (!%p259_p3), %vm384_vm1, %vm894_vm2  ;;  %s895_s13 = smov (!%p259_p3), 4   ;;  %s896_s14 = smov (!%p259_p3), 8   ;;  %vm365_vm5 = vcmask (!%p259_p3), 64512   ;;  %vm377_vm6 = vcmask (!%p259_p3), 97280   ;;  %vm326_vm7 = vcmask (!%p259_p3), 60416   ;;  %v494_v21 = vld [vmem:[%s1029_s3] sm:$0xff] (!%p259_p3) }
   0x9   : > { %832 = vmatprep.subr.msk.bf16.mxu0 (!%p259_p3), %vm831_vm3, %v830_v3  ;;  %327 = vst.msk [vmem:[#allocation3] sm:$0xf] (!%p259_p3), %vm326_vm7, %v893_v0  ;;  %v782_v20 = vld [vmem:[%s1028_s2] ss:$0 sm:$0xff] (!%p259_p3)  ;;  %v495_v22 = vld [vmem:[%s1029_s3 + $0x8] sm:$0xff] (!%p259_p3)  ;;  %v496_v31 = vld [vmem:[%s1029_s3 + $0x10] sm:$0xff] (!%p259_p3) }
   0xa   : > { %835 = vmatpush3.bf16.msk.msra.mxu0 (!%p259_p3), %vm831_vm3, %v830_v3  ;;  %v836_v24 = vpack.c.bf16 (!%p259_p3), %v495_v22, %v494_v21  ;;  %v588_v27 = vld [vmem:[%s1031_s5] sm:$0xf] (!%p259_p3)  ;;  %s897_s29 = smov (!%p259_p3), 16   ;;  %vm491_vm8 = vcmask (!%p259_p3), 130048   ;;  %vm504_vm9 = vcmask (!%p259_p3), 195584  }
   0xb   : > { %825 = vmatprep.subr.msk.mxu0 (!%p259_p3), %vm384_vm1, %v588_v27  ;;  %v786_v48 = vld [vmem:[%s1030_s4] ss:$0 sm:$0xff] (!%p259_p3) }
   0xc   : > { %837 = vmatprep.subr.bf16.mxu1 (!%p259_p3), %v836_v24  ;;  %v789_v49 = vld [vmem:[%s1032_s6] ss:$0 sm:$0xff] (!%p259_p3) }
   0xd   : > { %839 = vmatpush3.bf16.msra.mxu1 (!%p259_p3), %v836_v24 }
   0xe   : > { %s1039_s24 = smov (!%p299_p4, %s883_s24), 1  ;;  %820 = vmatprep.subr.mxu1 %v496_v31 }
   0xf   : > { %s795_s9 = sshll.u32 %s1039_s24, 4 }
  0x10   : > { %s306_s12 = scalar_lea.vmem %s1026_s0, %s795_s9 }
  0x11   : > { %v318_v4 = vld [vmem:[%s306_s12] sm:$0xff]  ;;  %v319_v5 = vld [vmem:[%s306_s12 + $0x8] sm:$0xff]  ;;  %821 = vmatpush3.msra.mxu1 %v496_v31 }
  0x12   : > { %339 = vst.msk [vmem:[#allocation2 + $0x4] sm:$0xff] %vm338_vm4, %v318_v4  ;;  %340 = vst.msk [vmem:[#allocation2 + $0xc] sm:$0xff] %vm338_vm4, %v319_v5 }
  0x19   : > { %v343_v6 = vld [vmem:[#allocation2 + $0x2] sm:$0xff]  ;;  %v344_v8 = vld [vmem:[#allocation2 + $0xa] sm:$0xff] }
  0x1a   : > { %v345_v7 = vld [vmem:[#allocation2 + $0x4] sm:$0xff]  ;;  %349 = vrot.lane.b32.xlu0 %v343_v6, %s895_s13  ;;  %v346_v9 = vld [vmem:[#allocation2 + $0xc] sm:$0xff] }
  0x1b   : > { %357 = vrot.lane.b32.xlu1 %v345_v7, %s896_s14  ;;  %v341_v10 = vld [vmem:[#allocation2] sm:$0xff]  ;;  %v342_v15 = vld [vmem:[#allocation2 + $0x8] sm:$0xff] }
  0x1e   : > { %351 = vrot.lane.b32.xlu0 %v344_v8, %s895_s13 }
  0x1f   : > { %359 = vrot.lane.b32.xlu1 %v346_v9, %s896_s14 }
  0x8c   : > { %v350_v11 = vpop.permute.xlu0 %349 }
  0x8d   : > { %v358_v12 = vpop.permute.xlu1 %357  ;;  %v363_v13 = vsel %vm338_vm4, %v341_v10, %v350_v11 }
  0x8e   : > { %v366_v14 = vsel %vm365_vm5, %v363_v13, %v358_v12 }
  0x8f   : > { %813 = vmatprep.mubr.msk.f32.mxu0 %vm377_vm6, %v366_v14 }
  0x90   : > { %v352_v16 = vpop.permute.xlu0 %351 }
  0x91   : > { %v360_v17 = vpop.permute.xlu1 %359  ;;  %v364_v18 = vsel %vm338_vm4, %v342_v15, %v352_v16 }
  0x92   : > { %v367_v19 = vsel %vm365_vm5, %v364_v18, %v360_v17 }
  0x93   : > { %814 = vmatmul.mubr.msk.f32.vlgmr.msra.gmra.mrb[0].mxu0 %vm377_vm6, %v367_v19 }
  0x94   : > { %827 = vmatprep.mubr.msk.f32.mxu0 %vm338_vm4, %v318_v4  ;;  %826 = vmatpush3.msk.msra.mxu0 %vm384_vm1, %v588_v27 }
  0x97   : > { %828 = vmatmul.mubr.msk.f32.vlgmr.msra.gmra.mrb[2].mxu0 %vm338_vm4, %v319_v5 }
 0x166   : > { %v815_v23 = vpop.f32.mrb[0].mxu0 }
 0x167   : > { %v460_v25 = vadd.f32 %v815_v23, %v782_v20  ;;  %v454_v26 = vpop.f32.mrb[1].mxu0 }
 0x168   : > { %v455_v28 = vadd.f32 %v782_v20, %v454_v26 }
 0x169   : > { %v464_v29 = vmax.f32 %v460_v25, 0.0 }
 0x16a   : > { %v463_v30 = vmax.f32 %v455_v28, 0.0  ;;  %v829_v46 = vpop.f32.mrb[2].mxu0 }
 0x16b   : > { %466 = vst.msk [vmem:[#allocation3 + $0xc] sm:$0xff] %vm365_vm5, %v464_v29  ;;  %v671_v47 = vpop.f32.mrb[3].mxu0  ;;  %v677_v53 = vadd.f32 %v829_v46, %v789_v49 }
 0x16c   : > { %465 = vst.msk [vmem:[#allocation3 + $0x4] sm:$0xff] %vm365_vm5, %v463_v30  ;;  %v672_v55 = vadd.f32 %v789_v49, %v671_v47 }
 0x172   : > { %v472_v34 = vld [vmem:[#allocation3 + $0xc] sm:$0xff] }
 0x173   : > { %v470_v32 = vld [vmem:[#allocation3 + $0xa] sm:$0xff]  ;;  %v469_v33 = vld [vmem:[#allocation3 + $0x2] sm:$0xff] }
 0x174   : > { %477 = vrot.lane.b32.xlu1 %v470_v32, %s896_s14  ;;  %475 = vrot.lane.b32.xlu0 %v469_v33, %s896_s14  ;;  %v471_v35 = vld [vmem:[#allocation3 + $0x4] sm:$0xff]  ;;  %s316_s14 = scalar_lea.vmem %s1033_s7, %s795_s9 }
 0x175   : > { %v468_v38 = vld [vmem:[#allocation3 + $0x8] sm:$0xff]  ;;  %v467_v39 = vld [vmem:[#allocation3] sm:$0xff] }
 0x178   : > { %485 = vrot.lane.b32.xlu1 %v472_v34, %s897_s29  ;;  %483 = vrot.lane.b32.xlu0 %v471_v35, %s897_s29 }
 0x1e6   : > { %v478_v36 = vpop.permute.xlu1 %477  ;;  %v476_v37 = vpop.permute.xlu0 %475 }
 0x1e7   : > { %v490_v40 = vsel %vm365_vm5, %v468_v38, %v478_v36  ;;  %v489_v41 = vsel %vm365_vm5, %v467_v39, %v476_v37 }
 0x1ea   : > { %v486_v42 = vpop.permute.xlu1 %485  ;;  %v484_v43 = vpop.permute.xlu0 %483 }
 0x1eb   : > { %v493_v44 = vsel %vm491_vm8, %v490_v40, %v486_v42  ;;  %v492_v45 = vsel %vm491_vm8, %v489_v41, %v484_v43 }
 0x1ec   : > { %822 = vmatprep.mubr.msk.f32.mxu1 %vm504_vm9, %v492_v45 }
 0x1ed   : > { %823 = vmatmul.mubr.msk.f32.vlgmr.msra.gmra.mrb[0].mxu1 %vm504_vm9, %v493_v44 }
 0x2c0   : > { %v824_v50 = vpop.f32.mrb[0].mxu1 }
 0x2c1   : > { %v583_v51 = vadd.f32 %v824_v50, %v786_v48  ;;  %v577_v52 = vpop.f32.mrb[1].mxu1 }
 0x2c2   : > { %v578_v54 = vadd.f32 %v786_v48, %v577_v52 }
 0x2c3   : > { %v587_v56 = vmax.f32 %v583_v51, 0.0 }
 0x2c4   : > { %v586_v57 = vmax.f32 %v578_v54, 0.0 }
 0x2c5   : > { %v681_v58 = vadd.f32 %v677_v53, %v587_v56 }
 0x2c6   : > { %v680_v59 = vadd.f32 %v672_v55, %v586_v57 }
 0x2c7   : > { %v683_v60 = vmax.f32 %v681_v58, 0.0 }
 0x2c8   : > { %v682_v61 = vmax.f32 %v680_v59, 0.0 }
 0x2c9   : > { %685 = vst.msk [vmem:[%s316_s14 + $0x8] sm:$0xff] %vm365_vm5, %v683_v60 }
 0x2ca   : > { %684 = vst.msk [vmem:[%s316_s14] sm:$0xff] %vm365_vm5, %v682_v61 }
 0x2cb PF: > { %s17_s26 = sadd.s32 1, %s891_s26   ;;  %s1034_s24 = smov %s887_s25 }
 0x2cc   : > { %p14_p5 = scmp.ge.s32.totalorder %s17_s26, 4   ;;  %s1035_s25 = smov %s1037_s27 }
 0x2ce   :  { %16 = sbr.rel (!%p14_p5) target bundleno = 2 (0x2), region = 86 }

</bundles_post_ra>
